<compile_context>
chip_gen: v7x
topology: tpu7x:2x2x1
jax: 0.10.0
libtpu: 0.0.40
codegen_flags: <defaults>
</compile_context>

<pallas_src>
import functools
from typing import NamedTuple

import jax
import jax.numpy as jnp
from jax import lax
from jax.experimental import pallas as pl
from jax.experimental.pallas import tpu as pltpu


def _round_up(a: int, b: int) -> int:
    return (a + b - 1) // b * b


class FusedMoEParams(NamedTuple):
    w_cat: jax.Array      # (D, E*opad + gpad), compute dtype
    b_cat: jax.Array      # (1, E*opad + gpad), f32
    num_experts: int
    in_dim: int
    out_dim: int
    opad: int             # per-expert output block width (lane aligned)
    gpad: int             # gate block width (lane aligned)


def fuse_moe_params(w_experts, b_experts, w_gate, b_gate, *,
                    compute_dtype=jnp.bfloat16) -> FusedMoEParams:
    """Build the fused, lane-aligned weight slab ONCE (outside the per-call path).

    Column layout: [expert 0 (opad) | expert 1 | ... | expert E-1 | gate (gpad)].
    Pad columns carry zero weights/biases; the kernel masks them out of the softmaxes.
    """
    n_exp, in_dim, out_dim = w_experts.shape
    opad = _round_up(out_dim, 128)
    gpad = _round_up(n_exp, 128)

    w_e = jnp.pad(w_experts, ((0, 0), (0, 0), (0, opad - out_dim)))       # (E, D, opad)
    w_e = jnp.transpose(w_e, (1, 0, 2)).reshape(in_dim, n_exp * opad)     # (D, E*opad)
    w_g = jnp.pad(w_gate, ((0, 0), (0, gpad - n_exp)))                    # (D, gpad)
    w_cat = jnp.concatenate([w_e, w_g], axis=1).astype(compute_dtype)

    b_e = jnp.pad(b_experts, ((0, 0), (0, opad - out_dim))).reshape(1, n_exp * opad)
    b_g = jnp.pad(b_gate, (0, gpad - n_exp)).reshape(1, gpad)
    b_cat = jnp.concatenate([b_e, b_g], axis=1).astype(jnp.float32)

    return FusedMoEParams(w_cat, b_cat, n_exp, in_dim, out_dim, opad, gpad)


def moe_kernel(x_ref, w_ref, b_ref, o_ref, *, num_experts, out_dim, opad, gpad,
               mxu_precision, approx_recip):
    # x_ref: (TT, D)                  token tile (f32 or bf16)
    # w_ref: (D, E*opad + gpad)       fused expert+gate weights (grid-invariant)
    # b_ref: (1, E*opad + gpad)       fused expert+gate biases, f32
    # o_ref: (TT, opad)               lane-dense output tile, f32
    eo = num_experts * opad

    # One lane-dense MXU matmul covers every expert AND the gate.
    h = jnp.dot(x_ref[...], w_ref[...], precision=mxu_precision,
                preferred_element_type=jnp.float32)
    h = h + b_ref[...]                                        # f32 from here on

    def softmax_last(z):
        ez = jnp.exp(z - jnp.max(z, axis=-1, keepdims=True))
        s = jnp.sum(ez, axis=-1, keepdims=True)
        if approx_recip:                                      # EUP vrcp, bf16 path only
            return ez * pl.reciprocal(s, approx=True)
        return ez / s                                         # exact, f32 path

    # Gate softmax over the lane-aligned gate block; pad lanes masked to -inf.
    g = h[:, eo:eo + gpad]
    if gpad > num_experts:
        gcol = lax.broadcasted_iota(jnp.int32, (1, gpad), 1)
        g = jnp.where(gcol < num_experts, g, -jnp.inf)
    gate = softmax_last(g)                                    # pad lanes are exactly 0

    # Per expert: ReLU -> softmax over the real O lanes -> gate-weighted accumulate.
    if opad > out_dim:
        omask = lax.broadcasted_iota(jnp.int32, (1, opad), 1) < out_dim
    acc = jnp.zeros((x_ref.shape[0], opad), jnp.float32)
    for e in range(num_experts):          # static unroll; elementwise / EUP only
        he = jnp.maximum(h[:, e * opad:(e + 1) * opad], 0.0)  # ReLU
        if opad > out_dim:
            he = jnp.where(omask, he, -jnp.inf)               # mask AFTER ReLU -> exp == 0
        acc = acc + gate[:, e:e + 1] * softmax_last(he)

    # Pad lanes of acc are exactly zero: single unmasked full-width store.
    o_ref[...] = acc.astype(o_ref.dtype)


def moe_forward(x, params: FusedMoEParams, *, token_tile=512):
    """x: (N, in_dim) -> (N, out_dim), using a pre-fused weight slab."""
    n_tok, in_dim = x.shape
    assert in_dim == params.in_dim
    n_exp, out_dim = params.num_experts, params.out_dim
    opad, gpad = params.opad, params.gpad
    fused = n_exp * opad + gpad
    compute_dtype = params.w_cat.dtype
    bpe = jnp.dtype(compute_dtype).itemsize

    # Token tiling: big, sublane-aligned tiles; pad tokens to a whole number of tiles.
    sub = 16 if compute_dtype == jnp.bfloat16 else 8
    tt = _round_up(min(token_tile, _round_up(n_tok, sub)), sub)
    n_pad = _round_up(n_tok, tt)
    x_p = x.astype(compute_dtype)
    if n_pad > n_tok:
        x_p = jnp.pad(x_p, ((0, n_pad - n_tok), (0, 0)))

    # Grid-invariant slabs: single-buffered (never re-fetched across grid steps).
    def _const_spec(shape):
        try:
            return pl.BlockSpec(shape, lambda i: (0, 0), pipeline_mode=pl.Buffered(1))
        except TypeError:     # older jax without pipeline_mode: default buffering
            return pl.BlockSpec(shape, lambda i: (0, 0))

    # VMEM budget: x (double-buffered), slab (single), out (double), + f32 temporaries.
    wbytes = in_dim * fused * bpe + fused * 4
    need = (2 * tt * in_dim * bpe + wbytes + 2 * tt * opad * 4
            + 4 * tt * (fused + 2 * opad))
    try:
        vmem_phys = getattr(pltpu.get_tpu_info(), "vmem_capacity_bytes", 128 << 20)
    except Exception:
        vmem_phys = 128 << 20
    vmem_limit = max(32 << 20, min(int(1.5 * need) + (4 << 20), (vmem_phys * 3) // 4))

    cost = pl.CostEstimate(
        flops=2 * n_pad * in_dim * fused + 8 * n_pad * n_exp * opad,
        transcendentals=n_pad * (n_exp * opad + gpad + n_exp + 1),
        bytes_accessed=n_pad * in_dim * bpe + wbytes + 4 * n_pad * opad,
    )

    kernel = functools.partial(
        moe_kernel, num_experts=n_exp, out_dim=out_dim, opad=opad, gpad=gpad,
        mxu_precision=(None if compute_dtype == jnp.bfloat16 else lax.Precision.HIGHEST),
        approx_recip=(compute_dtype == jnp.bfloat16),
    )
    out = pl.pallas_call(
        kernel,
        out_shape=jax.ShapeDtypeStruct((n_pad, opad), jnp.float32),
        grid_spec=pltpu.PrefetchScalarGridSpec(
            num_scalar_prefetch=0,
            grid=(n_pad // tt,),
            in_specs=[
                pl.BlockSpec((tt, in_dim), lambda i: (i, 0)),   # token tile
                _const_spec((in_dim, fused)),                   # fused W slab (resident)
                _const_spec((1, fused)),                        # fused bias
            ],
            out_specs=pl.BlockSpec((tt, opad), lambda i: (i, 0)),
        ),
        compiler_params=pltpu.CompilerParams(
            dimension_semantics=("parallel",),   # token tiles shard across v7x's 2 TCs
            vmem_limit_bytes=vmem_limit,
        ),
        cost_estimate=cost,
    )(x_p, params.w_cat, params.b_cat)

    return out[:n_tok, :out_dim]


def moe_reference(x, w_experts, b_experts, w_gate, b_gate):
    hi = lax.Precision.HIGHEST   # match the kernel's exact-f32 MXU path
    gate = jax.nn.softmax(jnp.dot(x, w_gate, precision=hi) + b_gate, axis=-1)      # (N, E)
    h = jnp.einsum("nd,edo->eno", x, w_experts, precision=hi) + b_experts[:, None, :]
    p = jax.nn.softmax(jnp.maximum(h, 0.0), axis=-1)                                # (E, N, O)
    return jnp.einsum("ne,eno->no", gate, p, precision=hi)


if __name__ == "__main__":
    # Small shapes consistent with the module: tokens=16, in_dim=32, out_dim=32, 4 experts.
    N, D, O, E = 16, 32, 32, 4
    key = jax.random.PRNGKey(0)
    kx, kw, kb, kgw, kgb = jax.random.split(key, 5)

    x = jax.random.normal(kx, (N, D), dtype=jnp.float32)
    bound = 1.0 / (D ** 0.5)   # mimic nn.Linear's uniform(-1/sqrt(in_dim), 1/sqrt(in_dim))
    w_experts = jax.random.uniform(kw, (E, D, O), minval=-bound, maxval=bound, dtype=jnp.float32)
    b_experts = jax.random.uniform(kb, (E, O), minval=-bound, maxval=bound, dtype=jnp.float32)
    w_gate = jax.random.uniform(kgw, (D, E), minval=-bound, maxval=bound, dtype=jnp.float32)
    b_gate = jax.random.uniform(kgb, (E,), minval=-bound, maxval=bound, dtype=jnp.float32)

    ref = moe_reference(x, w_experts, b_experts, w_gate, b_gate)

    # Weight fusion happens ONCE (outside the per-call path) and is reused per forward.
    params_f32 = fuse_moe_params(w_experts, b_experts, w_gate, b_gate,
                                 compute_dtype=jnp.float32)
    out_f32 = jax.block_until_ready(moe_forward(x, params_f32))
    assert out_f32.shape == (N, O)
    assert jnp.allclose(out_f32, ref, atol=2e-4, rtol=2e-3), "f32 kernel mismatch vs reference"

    # bf16 MXU operands (f32 accumulation, f32 softmax/combine): looser tolerance.
    params_bf16 = fuse_moe_params(w_experts, b_experts, w_gate, b_gate,
                                  compute_dtype=jnp.bfloat16)
    out_bf16 = jax.block_until_ready(moe_forward(x, params_bf16))
    assert out_bf16.shape == (N, O)
    assert jnp.allclose(out_bf16, ref, atol=2e-2, rtol=5e-2), "bf16 kernel mismatch vs reference"

    print("KERNEL_OK")
</pallas_src>

<mosaic_0001>
module attributes {stable_mosaic.version = 11 : i64} {
  func.func @moe_kernel(%arg0: i32, %arg1: memref<16x32xf32, #tpu.memory_space<vmem>>, %arg2: memref<32x640xf32, #tpu.memory_space<vmem>>, %arg3: memref<1x640xf32, #tpu.memory_space<vmem>>, %arg4: memref<16x128xf32, #tpu.memory_space<vmem>>) attributes {dimension_semantics = [#tpu.dimension_semantics<parallel>], iteration_bounds = array<i64: 1>, scalar_prefetch = 0 : i64, scratch_operands = 0 : i64, tpu.core_type = #tpu.core_type<tc>, window_params = [{transform_indices = @transform_0, window_bounds = array<i64: 16, 32>}, {pipeline_mode = #tpu.pipeline_mode<synchronous>, transform_indices = @transform_1, window_bounds = array<i64: 32, 640>}, {pipeline_mode = #tpu.pipeline_mode<synchronous>, transform_indices = @transform_2, window_bounds = array<i64: 1, 640>}, {transform_indices = @transform_3, window_bounds = array<i64: 16, 128>}]} {
    %c0 = arith.constant 0 : index
    %c0_0 = arith.constant 0 : index
    %0 = vector.load %arg1[%c0, %c0_0] : memref<16x32xf32, #tpu.memory_space<vmem>>, vector<16x32xf32>
    %c0_1 = arith.constant 0 : index
    %c0_2 = arith.constant 0 : index
    %1 = vector.load %arg2[%c0_1, %c0_2] : memref<32x640xf32, #tpu.memory_space<vmem>>, vector<32x640xf32>
    %cst = arith.constant dense<0.000000e+00> : vector<16x640xf32>
    %2 = tpu.matmul %0, %1, %cst {dimension_numbers = #tpu.dot_dimension_numbers<[1], [0], [0], [1], [0, 0, 1, 1], [], []>, precision = #tpu.contract_precision<fp32>} : vector<16x32xf32>, vector<32x640xf32>, vector<16x640xf32> -> vector<16x640xf32>
    %c0_3 = arith.constant 0 : index
    %c0_4 = arith.constant 0 : index
    %3 = vector.load %arg3[%c0_3, %c0_4] : memref<1x640xf32, #tpu.memory_space<vmem>>, vector<1x640xf32>
    %4 = vector.broadcast %3 : vector<1x640xf32> to vector<16x640xf32>
    %5 = arith.addf %2, %4 : vector<16x640xf32>
    %6 = vector.extract_strided_slice %5 {offsets = [0, 512], sizes = [16, 128], strides = [1, 1]} : vector<16x640xf32> to vector<16x128xf32>
    %7 = tpu.iota {dimensions = array<i32: 1>} : vector<1x128xi32>
    %c4_i32 = arith.constant 4 : i32
    %8 = vector.broadcast %c4_i32 : i32 to vector<1x128xi32>
    %9 = arith.cmpi slt, %7, %8 : vector<1x128xi32>
    %cst_5 = arith.constant 0xFF800000 : f32
    %10 = vector.shape_cast %9 : vector<1x128xi1> to vector<1x128xi1>
    %11 = vector.broadcast %10 : vector<1x128xi1> to vector<16x128xi1>
    %12 = vector.broadcast %cst_5 : f32 to vector<16x128xf32>
    %13 = arith.select %11, %6, %12 : vector<16x128xi1>, vector<16x128xf32>
    %cst_6 = arith.constant dense<0xFF800000> : vector<16xf32>
    %14 = vector.multi_reduction <maximumf>, %13, %cst_6 [1] : vector<16x128xf32> to vector<16xf32>
    %15 = vector.shape_cast %14 : vector<16xf32> to vector<16x1xf32>
    %16 = vector.broadcast %15 : vector<16x1xf32> to vector<16x128xf32>
    %17 = arith.subf %13, %16 : vector<16x128xf32>
    %18 = math.exp %17 : vector<16x128xf32>
    %cst_7 = arith.constant dense<0.000000e+00> : vector<16xf32>
    %19 = vector.multi_reduction <add>, %18, %cst_7 [1] : vector<16x128xf32> to vector<16xf32>
    %20 = vector.shape_cast %19 : vector<16xf32> to vector<16x1xf32>
    %21 = vector.broadcast %20 : vector<16x1xf32> to vector<16x128xf32>
    %22 = arith.divf %18, %21 : vector<16x128xf32>
    %23 = tpu.iota {dimensions = array<i32: 1>} : vector<1x128xi32>
    %c32_i32 = arith.constant 32 : i32
    %24 = vector.broadcast %c32_i32 : i32 to vector<1x128xi32>
    %25 = arith.cmpi slt, %23, %24 : vector<1x128xi32>
    %cst_8 = arith.constant 0.000000e+00 : f32
    %26 = vector.broadcast %cst_8 : f32 to vector<16x128xf32>
    %27 = vector.extract_strided_slice %5 {offsets = [0, 0], sizes = [16, 128], strides = [1, 1]} : vector<16x640xf32> to vector<16x128xf32>
    %cst_9 = arith.constant 0.000000e+00 : f32
    %28 = vector.broadcast %cst_9 : f32 to vector<16x128xf32>
    %29 = arith.maximumf %27, %28 : vector<16x128xf32>
    %cst_10 = arith.constant 0xFF800000 : f32
    %30 = vector.shape_cast %25 : vector<1x128xi1> to vector<1x128xi1>
    %31 = vector.broadcast %30 : vector<1x128xi1> to vector<16x128xi1>
    %32 = vector.broadcast %cst_10 : f32 to vector<16x128xf32>
    %33 = arith.select %31, %29, %32 : vector<16x128xi1>, vector<16x128xf32>
    %34 = vector.extract_strided_slice %22 {offsets = [0, 0], sizes = [16, 1], strides = [1, 1]} : vector<16x128xf32> to vector<16x1xf32>
    %cst_11 = arith.constant dense<0xFF800000> : vector<16xf32>
    %35 = vector.multi_reduction <maximumf>, %33, %cst_11 [1] : vector<16x128xf32> to vector<16xf32>
    %36 = vector.shape_cast %35 : vector<16xf32> to vector<16x1xf32>
    %37 = vector.broadcast %36 : vector<16x1xf32> to vector<16x128xf32>
    %38 = arith.subf %33, %37 : vector<16x128xf32>
    %39 = math.exp %38 : vector<16x128xf32>
    %cst_12 = arith.constant dense<0.000000e+00> : vector<16xf32>
    %40 = vector.multi_reduction <add>, %39, %cst_12 [1] : vector<16x128xf32> to vector<16xf32>
    %41 = vector.shape_cast %40 : vector<16xf32> to vector<16x1xf32>
    %42 = vector.broadcast %41 : vector<16x1xf32> to vector<16x128xf32>
    %43 = arith.divf %39, %42 : vector<16x128xf32>
    %44 = vector.broadcast %34 : vector<16x1xf32> to vector<16x128xf32>
    %45 = arith.mulf %44, %43 : vector<16x128xf32>
    %46 = arith.addf %26, %45 : vector<16x128xf32>
    %47 = vector.extract_strided_slice %5 {offsets = [0, 128], sizes = [16, 128], strides = [1, 1]} : vector<16x640xf32> to vector<16x128xf32>
    %cst_13 = arith.constant 0.000000e+00 : f32
    %48 = vector.broadcast %cst_13 : f32 to vector<16x128xf32>
    %49 = arith.maximumf %47, %48 : vector<16x128xf32>
    %cst_14 = arith.constant 0xFF800000 : f32
    %50 = vector.shape_cast %25 : vector<1x128xi1> to vector<1x128xi1>
    %51 = vector.broadcast %50 : vector<1x128xi1> to vector<16x128xi1>
    %52 = vector.broadcast %cst_14 : f32 to vector<16x128xf32>
    %53 = arith.select %51, %49, %52 : vector<16x128xi1>, vector<16x128xf32>
    %54 = vector.extract_strided_slice %22 {offsets = [0, 1], sizes = [16, 1], strides = [1, 1]} : vector<16x128xf32> to vector<16x1xf32>
    %cst_15 = arith.constant dense<0xFF800000> : vector<16xf32>
    %55 = vector.multi_reduction <maximumf>, %53, %cst_15 [1] : vector<16x128xf32> to vector<16xf32>
    %56 = vector.shape_cast %55 : vector<16xf32> to vector<16x1xf32>
    %57 = vector.broadcast %56 : vector<16x1xf32> to vector<16x128xf32>
    %58 = arith.subf %53, %57 : vector<16x128xf32>
    %59 = math.exp %58 : vector<16x128xf32>
    %cst_16 = arith.constant dense<0.000000e+00> : vector<16xf32>
    %60 = vector.multi_reduction <add>, %59, %cst_16 [1] : vector<16x128xf32> to vector<16xf32>
    %61 = vector.shape_cast %60 : vector<16xf32> to vector<16x1xf32>
    %62 = vector.broadcast %61 : vector<16x1xf32> to vector<16x128xf32>
    %63 = arith.divf %59, %62 : vector<16x128xf32>
    %64 = vector.broadcast %54 : vector<16x1xf32> to vector<16x128xf32>
    %65 = arith.mulf %64, %63 : vector<16x128xf32>
    %66 = arith.addf %46, %65 : vector<16x128xf32>
    %67 = vector.extract_strided_slice %5 {offsets = [0, 256], sizes = [16, 128], strides = [1, 1]} : vector<16x640xf32> to vector<16x128xf32>
    %cst_17 = arith.constant 0.000000e+00 : f32
    %68 = vector.broadcast %cst_17 : f32 to vector<16x128xf32>
    %69 = arith.maximumf %67, %68 : vector<16x128xf32>
    %cst_18 = arith.constant 0xFF800000 : f32
    %70 = vector.shape_cast %25 : vector<1x128xi1> to vector<1x128xi1>
    %71 = vector.broadcast %70 : vector<1x128xi1> to vector<16x128xi1>
    %72 = vector.broadcast %cst_18 : f32 to vector<16x128xf32>
    %73 = arith.select %71, %69, %72 : vector<16x128xi1>, vector<16x128xf32>
    %74 = vector.extract_strided_slice %22 {offsets = [0, 2], sizes = [16, 1], strides = [1, 1]} : vector<16x128xf32> to vector<16x1xf32>
    %cst_19 = arith.constant dense<0xFF800000> : vector<16xf32>
    %75 = vector.multi_reduction <maximumf>, %73, %cst_19 [1] : vector<16x128xf32> to vector<16xf32>
    %76 = vector.shape_cast %75 : vector<16xf32> to vector<16x1xf32>
    %77 = vector.broadcast %76 : vector<16x1xf32> to vector<16x128xf32>
    %78 = arith.subf %73, %77 : vector<16x128xf32>
    %79 = math.exp %78 : vector<16x128xf32>
    %cst_20 = arith.constant dense<0.000000e+00> : vector<16xf32>
    %80 = vector.multi_reduction <add>, %79, %cst_20 [1] : vector<16x128xf32> to vector<16xf32>
    %81 = vector.shape_cast %80 : vector<16xf32> to vector<16x1xf32>
    %82 = vector.broadcast %81 : vector<16x1xf32> to vector<16x128xf32>
    %83 = arith.divf %79, %82 : vector<16x128xf32>
    %84 = vector.broadcast %74 : vector<16x1xf32> to vector<16x128xf32>
    %85 = arith.mulf %84, %83 : vector<16x128xf32>
    %86 = arith.addf %66, %85 : vector<16x128xf32>
    %87 = vector.extract_strided_slice %5 {offsets = [0, 384], sizes = [16, 128], strides = [1, 1]} : vector<16x640xf32> to vector<16x128xf32>
    %cst_21 = arith.constant 0.000000e+00 : f32
    %88 = vector.broadcast %cst_21 : f32 to vector<16x128xf32>
    %89 = arith.maximumf %87, %88 : vector<16x128xf32>
    %cst_22 = arith.constant 0xFF800000 : f32
    %90 = vector.shape_cast %25 : vector<1x128xi1> to vector<1x128xi1>
    %91 = vector.broadcast %90 : vector<1x128xi1> to vector<16x128xi1>
    %92 = vector.broadcast %cst_22 : f32 to vector<16x128xf32>
    %93 = arith.select %91, %89, %92 : vector<16x128xi1>, vector<16x128xf32>
    %94 = vector.extract_strided_slice %22 {offsets = [0, 3], sizes = [16, 1], strides = [1, 1]} : vector<16x128xf32> to vector<16x1xf32>
    %cst_23 = arith.constant dense<0xFF800000> : vector<16xf32>
    %95 = vector.multi_reduction <maximumf>, %93, %cst_23 [1] : vector<16x128xf32> to vector<16xf32>
    %96 = vector.shape_cast %95 : vector<16xf32> to vector<16x1xf32>
    %97 = vector.broadcast %96 : vector<16x1xf32> to vector<16x128xf32>
    %98 = arith.subf %93, %97 : vector<16x128xf32>
    %99 = math.exp %98 : vector<16x128xf32>
    %cst_24 = arith.constant dense<0.000000e+00> : vector<16xf32>
    %100 = vector.multi_reduction <add>, %99, %cst_24 [1] : vector<16x128xf32> to vector<16xf32>
    %101 = vector.shape_cast %100 : vector<16xf32> to vector<16x1xf32>
    %102 = vector.broadcast %101 : vector<16x1xf32> to vector<16x128xf32>
    %103 = arith.divf %99, %102 : vector<16x128xf32>
    %104 = vector.broadcast %94 : vector<16x1xf32> to vector<16x128xf32>
    %105 = arith.mulf %104, %103 : vector<16x128xf32>
    %106 = arith.addf %86, %105 : vector<16x128xf32>
    %c0_25 = arith.constant 0 : index
    %c0_26 = arith.constant 0 : index
    %107 = vector.load %arg4[%c0_25, %c0_26] : memref<16x128xf32, #tpu.memory_space<vmem>>, vector<16x128xf32>
    tpu.vector_store %arg4[%c0_25, %c0_26], %106 {strides = array<i32>} : memref<16x128xf32, #tpu.memory_space<vmem>>, vector<16x128xf32>,
    return
  }
  func.func @transform_0(%arg0: i32) -> (i32, i32) {
    %c0_i32 = arith.constant 0 : i32
    %c0_i32_0 = arith.constant 0 : i32
    return %arg0, %c0_i32 : i32, i32
  }
  func.func @transform_1(%arg0: i32) -> (i32, i32) {
    %c0_i32 = arith.constant 0 : i32
    %c0_i32_0 = arith.constant 0 : i32
    %c0_i32_1 = arith.constant 0 : i32
    return %c0_i32, %c0_i32_0 : i32, i32
  }
  func.func @transform_2(%arg0: i32) -> (i32, i32) {
    %c0_i32 = arith.constant 0 : i32
    %c0_i32_0 = arith.constant 0 : i32
    %c0_i32_1 = arith.constant 0 : i32
    return %c0_i32, %c0_i32_0 : i32, i32
  }
  func.func @transform_3(%arg0: i32) -> (i32, i32) {
    %c0_i32 = arith.constant 0 : i32
    %c0_i32_0 = arith.constant 0 : i32
    return %arg0, %c0_i32 : i32, i32
  }
}

</mosaic_0001>

<bundles_post_ra>
// kernel: tpu_custom_call.1
= control target key start
LH: loop header
LB: loop body
LE: loop exit
PB: predicated region body
PF: predicated region fallthrough
CT: control target
= control target key end

     0   :  { %8 = vsyncpa [#allocation3], 0  ;;  %s2890_s0 = inlined_call_operand.hbm [shape: f32[16,32], index: 0, kind: input, shape index: {}]   ;;  %s2891_s1 = inlined_call_operand.hbm [shape: f32[32,640], index: 1, kind: input, shape index: {}]   ;;  %s2892_s2 = inlined_call_operand.vmem [shape: f32[1,640], index: 2, kind: input, shape index: {}]   ;;  %s2893_s3 = inlined_call_operand.hbm [shape: f32[16,128], index: 3, kind: output, shape index: {}]  }
   0x1   :  { %9 = vsyncpa [#allocation6], 0 }
   0x2   :  { %10 = vsyncpa [#allocation4], 0  ;;  %s2435_s12 = smov [#allocation2]   ;;  %s2363_s16 = scalar_lea.hbm %s2890_s0, 256 }
   0x3   :  { %s16_s13 = sshll.u32 %s2435_s12, 4  ;;  %p2364_p0 = scmp.ne.s32.totalorder %s2890_s0, %s2363_s16  ;;  %s17_s13 = int_to_ptr.vmem [resolvable:$true] %s16_s13 }
   0x4   :  { %p2367_p1 = scmp.lt.u32.totalorder %s2363_s16, %s2890_s0 }
   0x6   :  { %p2369_p2 = pnand %p2367_p1, %p2364_p0 }
   0x8   :  { %2372 = shalt.err (!%p2369_p2)
}
   0x9   :  { %s2373_s21 = scalar_lea.vmem %s17_s13, 256  ;;  %p2378_p4 = scmp.lt.s32.totalorder %s17_s13, %s17_s13 }
   0xa   :  { %p2374_p3 = scmp.ne.s32.totalorder %s17_s13, %s2373_s21  ;;  %p2379_p5 = scmp.lt.s32.totalorder %s2373_s21, %s2373_s21 }
   0xc   :  { %p2380_p6 = por %p2379_p5, %p2378_p4 }
   0xe   :  { %p2381_p7 = pnand %p2380_p6, %p2374_p3 }
  0x10   :  { %2384 = shalt.err (!%p2381_p7)
}
  0x11   :  { %s2436_s22 = smov 128   ;;  %s2437_s23 = smov 8  }
  0x12   :  { %22 = dma.hbm_to_vmem [thread:$0]  %s2890_s0, 256, %s17_s13, [#allocation3], %s2436_s22, %s2436_s22, %s2437_s23  }
  0x13   :  { %s2438_s26 = smov [#allocation5]   ;;  %s2385_s30 = scalar_lea.hbm %s2891_s1, 2560 }
  0x14   :  { %s28_s27 = sshll.u32 %s2438_s26, 4  ;;  %p2386_p8 = scmp.ne.s32.totalorder %s2891_s1, %s2385_s30  ;;  %s29_s27 = int_to_ptr.vmem [resolvable:$true] %s28_s27 }
  0x15   :  { %p2389_p9 = scmp.lt.u32.totalorder %s2385_s30, %s2891_s1 }
  0x17   :  { %p2391_p10 = pnand %p2389_p9, %p2386_p8 }
  0x19   :  { %2394 = shalt.err (!%p2391_p10)
}
  0x1a   :  { %s2395_s8 = scalar_lea.vmem %s29_s27, 2560  ;;  %p2400_p12 = scmp.lt.s32.totalorder %s29_s27, %s29_s27 }
  0x1b   :  { %p2396_p11 = scmp.ne.s32.totalorder %s29_s27, %s2395_s8  ;;  %p2401_p13 = scmp.lt.s32.totalorder %s2395_s8, %s2395_s8 }
  0x1d   :  { %p2402_p0 = por %p2401_p13, %p2400_p12 }
  0x1f   :  { %p2403_p1 = pnand %p2402_p0, %p2396_p11 }
  0x21   :  { %2406 = shalt.err (!%p2403_p1)
}
  0x22   :  { %s2439_s0 = smov 640   ;;  %s2440_s9 = smov 40  }
  0x23   :  { %34 = dma.hbm_to_vmem [thread:$0]  %s2891_s1, 2560, %s29_s27, [#allocation6], %s2439_s0, %s2439_s0, %s2440_s9  }
  0x24   :  { %2429 = dma.done.wait [#allocation3], 256  }
  0x25   :  { %2430 = vsyncadd [#allocation3], 4294967040 }
  0x26   :  { %2431 = dma.done.wait [#allocation6], 2560  }
  0x27   :  { %2432 = vsyncadd [#allocation6], 4294964736  ;;  %v2441_v0 = vmov 0.0   ;;  %v46_v1 = vld [vmem:[#allocation5 + $0x8] sm:$0xff]  ;;  %v51_v2 = vld [vmem:[#allocation5 + $0x30] sm:$0xff]  ;;  %vm92_vm0 = vcmask 261120  }
  0x28   :  { %171 = vmatprep.mubr.f32.mxu1 %v2441_v0  ;;  %393 = vmatprep.mubr.f32.mxu0 %v2441_v0  ;;  %v45_v3 = vld [vmem:[#allocation5] sm:$0xff]  ;;  %v99_v4 = vand.u32 4294901760, %v46_v1  ;;  %v103_v5 = vand.u32 4294901760, %v51_v2  ;;  %v50_v6 = vld [vmem:[#allocation5 + $0x28] sm:$0xff]  ;;  %v56_v8 = vld [vmem:[#allocation5 + $0x58] sm:$0xff] }
  0x29   :  { %v101_v7 = vand.u32 4294901760, %v45_v3  ;;  %v61_v9 = vld [vmem:[#allocation5 + $0x80] sm:$0xff]  ;;  %v105_v10 = vand.u32 4294901760, %v50_v6  ;;  %v107_v11 = vand.u32 4294901760, %v56_v8  ;;  %v55_v13 = vld [vmem:[#allocation5 + $0x50] sm:$0xff]  ;;  %v60_v18 = vld [vmem:[#allocation5 + $0x78] sm:$0xff] }
  0x2a   :  { %v111_v12 = vand.u32 4294901760, %v61_v9  ;;  %v2496_v14 = vpack.c.bf16 %v103_v5, %v99_v4  ;;  %v2498_v15 = vsub.f32 %v46_v1, %v99_v4  ;;  %v2500_v16 = vsub.f32 %v51_v2, %v103_v5  ;;  %v43_v19 = vld [vmem:[#allocation2] sm:$0xff]  ;;  %v44_v32 = vld [vmem:[#allocation2 + $0x8] sm:$0xff]  ;;  %v53_v62 = vld [vmem:[#allocation5 + $0x40] sm:$0xff] }
  0x2b   :  { %v2502_v17 = vsub.f32 %v45_v3, %v101_v7  ;;  %v2504_v20 = vpack.c.bf16 %v105_v10, %v101_v7  ;;  %v2506_v21 = vsub.f32 %v50_v6, %v105_v10  ;;  %v2510_v23 = vsub.f32 %v56_v8, %v107_v11  ;;  %v48_v57 = vld [vmem:[#allocation5 + $0x18] sm:$0xff]  ;;  %v47_v4 = vld [vmem:[#allocation5 + $0x10] sm:$0xff] }
  0x2c   :  { %v2508_v22 = vpack.c.bf16 %v111_v12, %v107_v11  ;;  %2100 = vmatprep.subr.bf16.mxu1 %v2496_v14  ;;  %v2115_v24 = vpack.c.bf16 %v2500_v16, %v2498_v15  ;;  %v2516_v26 = vsub.f32 %v61_v9, %v111_v12  ;;  %v109_v27 = vand.u32 4294901760, %v55_v13  ;;  %v52_v5 = vld [vmem:[#allocation5 + $0x38] sm:$0xff] }
  0x2d   :  { %v202_v25 = vand.u32 4294901760, %v2502_v17  ;;  %2102 = vmatpush1.bf16.msra.mxu1 %v2504_v20  ;;  %v214_v28 = vand.u32 4294901760, %v2506_v21  ;;  %v2117_v29 = vpack.c.bf16 %v2506_v21, %v2502_v17  ;;  %v113_v30 = vand.u32 4294901760, %v60_v18 }
  0x2e   :  { %v94_v31 = vsel %vm92_vm0, %v43_v19, 0  ;;  %2116 = vmatprep.subr.bf16.mxu0 %v2115_v24  ;;  %2104 = vmatprep.subr.bf16.mxu1 %v2508_v22  ;;  %v2524_v33 = vsub.f32 %v55_v13, %v109_v27  ;;  %v2119_v34 = vpack.c.bf16 %v2516_v26, %v2510_v23  ;;  %v196_v36 = vand.u32 4294901760, %v2498_v15 }
  0x2f   :  { %v2528_v35 = vand.u32 4294901760, %v94_v31  ;;  %2118 = vmatpush1.bf16.msra.mxu0 %v2117_v29  ;;  %v2531_v37 = vpack.c.bf16 %v113_v30, %v109_v27  ;;  %v2533_v38 = vsub.f32 %v60_v18, %v113_v30  ;;  %v208_v39 = vand.u32 4294901760, %v2500_v16  ;;  %v58_v18 = vld [vmem:[#allocation5 + $0x68] sm:$0xff]  ;;  %v63_v29 = vld [vmem:[#allocation5 + $0x90] sm:$0xff] }
  0x30   :  { %v203_v40 = vsub.f32 %v2502_v17, %v202_v25  ;;  %2120 = vmatprep.subr.bf16.mxu0 %v2119_v34  ;;  %v197_v42 = vsub.f32 %v2498_v15, %v196_v36  ;;  %v215_v43 = vsub.f32 %v2506_v21, %v214_v28  ;;  %v97_v44 = vsel %vm92_vm0, %v44_v32, 0 }
  0x31   :  { %v2540_v41 = vsub.f32 %v94_v31, %v2528_v35  ;;  %2106 = vmatpush1.bf16.msra.mxu1 %v2531_v37  ;;  %v2121_v45 = vpack.c.bf16 %v2533_v38, %v2524_v33  ;;  %v209_v46 = vsub.f32 %v2500_v16, %v208_v39  ;;  %v2555_v48 = vand.u32 4294901760, %v97_v44 }
  0x32   :  { %v204_v47 = vand.u32 4294901760, %v203_v40  ;;  %v198_v50 = vand.u32 4294901760, %v197_v42  ;;  %v216_v51 = vand.u32 4294901760, %v215_v43  ;;  %v220_v52 = vand.u32 4294901760, %v2510_v23  ;;  %v62_v40 = vld [vmem:[#allocation5 + $0x88] sm:$0xff] }
  0x33   :  { %v2558_v49 = vand.u32 4294901760, %v2540_v41  ;;  %2122 = vmatpush1.bf16.msra.mxu0 %v2121_v45  ;;  %v210_v53 = vand.u32 4294901760, %v209_v46  ;;  %v2562_v54 = vsub.f32 %v97_v44, %v2555_v48  ;;  %v232_v55 = vand.u32 4294901760, %v2516_v26 }
  0x34   :  { %v226_v56 = vand.u32 4294901760, %v2524_v33  ;;  %v2109_v59 = vpack.c.bf16 %v216_v51, %v204_v47  ;;  %2124 = vmatprep.subr.bf16.mxu0 %v2496_v14  ;;  %v221_v60 = vsub.f32 %v2510_v23, %v220_v52  ;;  %v238_v61 = vand.u32 4294901760, %v2533_v38 }
  0x35   :  { %v175_v58 = vsub.f32 %v2540_v41, %v2558_v49  ;;  %v2107_v63 = vpack.c.bf16 %v210_v53, %v198_v50  ;;  %v2574_v1 = vand.u32 4294901760, %v2562_v54  ;;  %v233_v2 = vsub.f32 %v2516_v26, %v232_v55 }
  0x36   :  { %v227_v3 = vsub.f32 %v2524_v33, %v226_v56  ;;  %396 = vmatmul.mubr.f32.vlgmr.msra.gmra.mrb[0].mxu0 %v2540_v41  ;;  %v222_v7 = vand.u32 4294901760, %v221_v60  ;;  %v239_v8 = vsub.f32 %v2533_v38, %v238_v61  ;;  %v691_v9 = vand.u32 4294901760, %v48_v57  ;;  %v57_v38 = vld [vmem:[#allocation5 + $0x60] sm:$0xff] }
  0x37   :  { %v2580_v6 = vand.u32 4294901760, %v175_v58  ;;  %2108 = vmatprep.subr.bf16.mxu1 %v2107_v63  ;;  %2126 = vmatpush1.bf16.msra.mxu0 %v2504_v20  ;;  %v186_v10 = vsub.f32 %v2562_v54, %v2574_v1  ;;  %v234_v11 = vand.u32 4294901760, %v233_v2  ;;  %v695_v13 = vand.u32 4294901760, %v53_v62 }
  0x38   :  { %v228_v12 = vand.u32 4294901760, %v227_v3  ;;  %v240_v19 = vand.u32 4294901760, %v239_v8  ;;  %401 = vmatprep.mubr.f32.mxu0 %v2441_v0  ;;  %v2589_v24 = vsub.f32 %v48_v57, %v691_v9  ;;  %v693_v26 = vand.u32 4294901760, %v47_v4  ;;  %2128 = vmatprep.subr.bf16.mxu0 %v2508_v22 }
  0x39   :  { %177 = vmatmul.mubr.f32.vlgmr.msra.gmra.mrb[0].mxu1 %v2580_v6  ;;  %v697_v27 = vand.u32 4294901760, %v52_v5  ;;  %v2592_v30 = vand.u32 4294901760, %v186_v10  ;;  %v2111_v31 = vpack.c.bf16 %v234_v11, %v222_v7  ;;  %v2594_v32 = vpack.c.bf16 %v695_v13, %v691_v9  ;;  %v2674_v10 = vld [vmem:[#allocation5 + $0x20] sm:$0xff]  ;;  %v2676_v11 = vld [vmem:[#allocation5 + $0x48] sm:$0xff] }
  0x3a   :  { %2110 = vmatpush1.bf16.msra.mxu1 %v2109_v59  ;;  %182 = vmatprep.mubr.f32.mxu1 %v2441_v0  ;;  %v2596_v34 = vsub.f32 %v53_v62, %v695_v13  ;;  %v2113_v42 = vpack.c.bf16 %v240_v19, %v228_v12  ;;  %v2602_v44 = vsub.f32 %v47_v4, %v693_v26  ;;  %v699_v45 = vand.u32 4294901760, %v58_v18  ;;  %v2679_v19 = vld [vmem:[#allocation5 + $0x70] sm:$0xff] }
  0x3b   :  { %404 = vmatmul.mubr.f32.gmra.mrb[2].mxu0 %v2562_v54  ;;  %v2600_v43 = vpack.c.bf16 %v697_v27, %v693_v26  ;;  %2112 = vmatprep.subr.bf16.mxu1 %v2111_v31  ;;  %v2605_v46 = vsub.f32 %v52_v5, %v697_v27  ;;  %v2131_v47 = vpack.c.bf16 %v208_v39, %v196_v36  ;;  %v703_v51 = vand.u32 4294901760, %v63_v29 }
  0x3c   :  { %2130 = vmatpush1.bf16.msra.mxu0 %v2531_v37  ;;  %v2133_v50 = vpack.c.bf16 %v214_v28, %v202_v25  ;;  %482 = vmatprep.mubr.f32.mxu0 %v2441_v0  ;;  %v2617_v53 = vsub.f32 %v58_v18, %v699_v45  ;;  %v701_v57 = vand.u32 4294901760, %v57_v38  ;;  %v705_v58 = vand.u32 4294901760, %v62_v40 }
  0x3d   :  { %188 = vmatmul.mubr.f32.gmra.mrb[2].mxu1 %v2592_v30  ;;  %v2135_v15 = vpack.c.bf16 %v232_v55, %v220_v52  ;;  %v2622_v16 = vpack.c.bf16 %v703_v51, %v699_v45  ;;  %v2624_v17 = vsub.f32 %v63_v29, %v703_v51  ;;  %v2137_v21 = vpack.c.bf16 %v238_v61, %v226_v56  ;;  %v2686_v45 = vld [vmem:[#allocation5 + $0x98] sm:$0xff] }
  0x3e   :  { %2114 = vmatpush1.bf16.msra.mxu1 %v2113_v42  ;;  %298 = vmatprep.mubr.f32.mxu1 %v2441_v0  ;;  %v788_v25 = vand.u32 4294901760, %v2589_v24  ;;  %v2631_v28 = vpack.c.bf16 %v705_v58, %v701_v57  ;;  %v2633_v23 = vsub.f32 %v57_v38, %v701_v57  ;;  %v2635_v36 = vsub.f32 %v62_v40, %v705_v58 }
  0x3f   :  { %2148 = vmatprep.subr.bf16.mxu1 %v2594_v32  ;;  %486 = vmatmul.mubr.f32.vlgmr.msra.gmra.mrb[0].mxu0 %v2558_v49  ;;  %v800_v39 = vand.u32 4294901760, %v2596_v34  ;;  %v794_v52 = vand.u32 4294901760, %v2602_v44  ;;  %v806_v55 = vand.u32 4294901760, %v2605_v46  ;;  %v812_v56 = vand.u32 4294901760, %v2617_v53 }
  0x40   :  { %2132 = vmatprep.subr.bf16.mxu0 %v2131_v47  ;;  %491 = vmatprep.mubr.f32.mxu0 %v2441_v0  ;;  %v789_v33 = vsub.f32 %v2589_v24, %v788_v25  ;;  %v824_v60 = vand.u32 4294901760, %v2624_v17  ;;  %v818_v61 = vand.u32 4294901760, %v2633_v23  ;;  %v830_v62 = vand.u32 4294901760, %v2635_v36 }
  0x41   :  { %300 = vmatmul.mubr.f32.vlgmr.msra.gmra.mrb[0].mxu1 %v2528_v35  ;;  %2134 = vmatpush1.bf16.msra.mxu0 %v2133_v50  ;;  %v801_v59 = vsub.f32 %v2596_v34, %v800_v39  ;;  %v795_v2 = vsub.f32 %v2602_v44, %v794_v52  ;;  %v807_v3 = vsub.f32 %v2605_v46, %v806_v55  ;;  %v1284_v40 = vand.u32 4294901760, %v2674_v10 }
  0x42   :  { %2150 = vmatpush1.bf16.msra.mxu1 %v2600_v43  ;;  %305 = vmatprep.mubr.f32.mxu1 %v2441_v0  ;;  %v790_v63 = vand.u32 4294901760, %v789_v33  ;;  %v813_v4 = vsub.f32 %v2617_v53, %v812_v56  ;;  %v825_v7 = vsub.f32 %v2624_v17, %v824_v60  ;;  %v819_v8 = vsub.f32 %v2633_v23, %v818_v61 }
  0x43   :  { %2152 = vmatprep.subr.bf16.mxu1 %v2622_v16  ;;  %495 = vmatmul.mubr.f32.gmra.mrb[2].mxu0 %v2574_v1  ;;  %v802_v5 = vand.u32 4294901760, %v801_v59  ;;  %v831_v9 = vsub.f32 %v2635_v36, %v830_v62  ;;  %v796_v12 = vand.u32 4294901760, %v795_v2  ;;  %v808_v13 = vand.u32 4294901760, %v807_v3 }
  0x44   :  { %2136 = vmatprep.subr.bf16.mxu0 %v2135_v15  ;;  %589 = vmatprep.mubr.f32.mxu0 %v2441_v0  ;;  %v814_v18 = vand.u32 4294901760, %v813_v4  ;;  %v826_v27 = vand.u32 4294901760, %v825_v7  ;;  %v820_v29 = vand.u32 4294901760, %v819_v8  ;;  %v1287_v42 = vand.u32 4294901760, %v2676_v11 }
  0x45   :  { %307 = vmatmul.mubr.f32.gmra.mrb[2].mxu1 %v2555_v48  ;;  %2138 = vmatpush1.bf16.msra.mxu0 %v2137_v21  ;;  %v2155_v26 = vpack.c.bf16 %v802_v5, %v790_v63  ;;  %v2157_v31 = vpack.c.bf16 %v808_v13, %v796_v12  ;;  %v832_v38 = vand.u32 4294901760, %v831_v9  ;;  %v1290_v50 = vand.u32 4294901760, %v2679_v19 }
  0x46   :  { %2154 = vmatpush1.bf16.msra.mxu1 %v2631_v28  ;;  %763 = vmatprep.mubr.f32.mxu1 %v2441_v0  ;;  %v2159_v47 = vpack.c.bf16 %v826_v27, %v814_v18  ;;  %v2694_v51 = vsub.f32 %v2674_v10, %v1284_v40  ;;  %v2699_v57 = vsub.f32 %v2676_v11, %v1287_v42 }
  0x47   :  { %2156 = vmatprep.subr.bf16.mxu1 %v2155_v26  ;;  %2140 = vmatprep.subr.bf16.mxu0 %v2496_v14  ;;  %v1293_v14 = vand.u32 4294901760, %v2686_v45  ;;  %v2707_v58 = vsub.f32 %v2679_v19, %v1290_v50  ;;  %v2161_v15 = vpack.c.bf16 %v832_v38, %v820_v29  ;;  %v2167_v13 = vpack.c.bf16 %v2624_v17, %v2617_v53  ;;  %v65_v17 = vld [vmem:[%s2892_s2] sm:$0x1f]  ;;  %s2446_s2 = smov [#allocation7]  }
  0x48   :  { %591 = vmatmul.mubr.f32.vlgmr.msra.gmra.mrb[0].mxu0 %v2528_v35  ;;  %v1375_v21 = vand.u32 4294901760, %v2694_v51  ;;  %v1382_v33 = vand.u32 4294901760, %v2699_v57  ;;  %v2169_v26 = vpack.c.bf16 %v2635_v36, %v2633_v23  ;;  %v2211_v29 = vpack.c.bf16 %v2699_v57, %v2694_v51  ;;  %s1984_s13 = sshll.u32 %s2446_s2, 4  ;;  %s1985_s13 = int_to_ptr.vmem [resolvable:$true] %s1984_s13 }
  0x49   :  { %769 = vmatmul.mubr.f32.vlgmr.msra.gmra.mrb[4].mxu1 %v2580_v6  ;;  %2142 = vmatpush1.bf16.msra.mxu0 %v2504_v20  ;;  %v2163_v20 = vpack.c.bf16 %v2596_v34, %v2589_v24  ;;  %v1389_v59 = vand.u32 4294901760, %v2707_v58  ;;  %v2719_v63 = vsub.f32 %v2686_v45, %v1293_v14  ;;  %v2179_v38 = vpack.c.bf16 %v800_v39, %v788_v25  ;;  %s2407_s14 = scalar_lea.vmem %s1985_s13, 256  ;;  %p2412_p3 = scmp.lt.s32.totalorder %s1985_s13, %s1985_s13 }
  0x4a   :  { %2158 = vmatpush1.bf16.msra.mxu1 %v2157_v31  ;;  %774 = vmatprep.mubr.f32.mxu1 %v2441_v0  ;;  %v1376_v2 = vsub.f32 %v2694_v51, %v1375_v21  ;;  %v1383_v3 = vsub.f32 %v2699_v57, %v1382_v33  ;;  %v2181_v24 = vpack.c.bf16 %v806_v55, %v794_v52  ;;  %p2408_p2 = scmp.ne.s32.totalorder %s1985_s13, %s2407_s14  ;;  %p2413_p4 = scmp.lt.s32.totalorder %s2407_s14, %s2407_s14 }
  0x4b   :  { %2160 = vmatprep.subr.bf16.mxu1 %v2159_v47  ;;  %596 = vmatprep.mubr.f32.mxu0 %v2441_v0  ;;  %v1390_v4 = vsub.f32 %v2707_v58, %v1389_v59  ;;  %v1396_v5 = vand.u32 4294901760, %v2719_v63  ;;  %v2215_v31 = vpack.c.bf16 %v2719_v63, %v2707_v58  ;;  %v2195_v47 = vpack.c.bf16 %v1287_v42, %v1284_v40 }
  0x4c   :  { %598 = vmatmul.mubr.f32.gmra.mrb[2].mxu0 %v2555_v48  ;;  %2144 = vmatprep.subr.bf16.mxu0 %v2508_v22  ;;  %v2165_v22 = vpack.c.bf16 %v2605_v46, %v2602_v44  ;;  %v1377_v7 = vand.u32 4294901760, %v1376_v2  ;;  %v1384_v8 = vand.u32 4294901760, %v1383_v3  ;;  %v2199_v34 = vpack.c.bf16 %v1293_v14, %v1290_v50  ;;  %p2414_p5 = por %p2413_p4, %p2412_p3 }
  0x4d   :  { %780 = vmatmul.mubr.f32.gmra.mrb[6].mxu1 %v2592_v30  ;;  %2146 = vmatpush1.bf16.msra.mxu0 %v2531_v37  ;;  %v1391_v9 = vand.u32 4294901760, %v1390_v4  ;;  %v1397_v37 = vsub.f32 %v2719_v63, %v1396_v5  ;;  %v2185_v44 = vpack.c.bf16 %v830_v62, %v818_v61  ;;  %v2227_v46 = vpack.c.bf16 %v1382_v33, %v1375_v21 }
  0x4e   :  { %2162 = vmatpush1.bf16.msra.mxu1 %v2161_v15  ;;  %890 = vmatprep.mubr.f32.mxu1 %v2441_v0  ;;  %v2203_v12 = vpack.c.bf16 %v1384_v8, %v1377_v7  ;;  %p2415_p6 = pnand %p2414_p5, %p2408_p2 }
  0x4f   :  { %2164 = vmatprep.subr.bf16.mxu1 %v2163_v20  ;;  %676 = vmatprep.mubr.f32.mxu0 %v2441_v0  ;;  %v1398_v18 = vand.u32 4294901760, %v1397_v37 }
  0x50   :  { %678 = vmatmul.mubr.f32.vlgmr.msra.gmra.mrb[0].mxu0 %v2528_v35  ;;  %2204 = vmatprep.subr.bf16.mxu0 %v2203_v12 }
  0x51   :  { %892 = vmatmul.mubr.f32.vlgmr.msra.gmra.mrb[4].mxu1 %v2528_v35  ;;  %683 = vmatprep.mubr.f32.mxu0 %v2441_v0  ;;  %v2207_v27 = vpack.c.bf16 %v1398_v18, %v1391_v9 }
  0x52   :  { %2166 = vmatpush1.bf16.msra.mxu1 %v2165_v22  ;;  %897 = vmatprep.mubr.f32.mxu1 %v2441_v0 }
  0x53   :  { %2206 = vmatpush3.bf16.msra.mxu0 %v2203_v12  ;;  %2168 = vmatprep.subr.bf16.mxu1 %v2167_v13 }
  0x54   :  { %685 = vmatmul.mubr.f32.gmra.mrb[2].mxu0 %v2555_v48  ;;  %2208 = vmatprep.subr.bf16.mxu0 %v2207_v27 }
  0x55   :  { %899 = vmatmul.mubr.f32.gmra.mrb[6].mxu1 %v2555_v48  ;;  %2052 = vmatprep.mubr.f32.mxu0 %v2528_v35 }
  0x56   :  { %2170 = vmatpush1.bf16.msra.mxu1 %v2169_v26  ;;  %985 = vmatprep.mubr.f32.mxu1 %v2441_v0 }
  0x57   :  { %2210 = vmatpush3.bf16.msra.mxu0 %v2207_v27  ;;  %2172 = vmatprep.subr.bf16.mxu1 %v2594_v32 }
  0x58   :  { %2212 = vmatprep.subr.bf16.mxu0 %v2211_v29 }
  0x59   :  { %988 = vmatmul.mubr.f32.vlgmr.msra.gmra.mrb[4].mxu1 %v2540_v41 }
  0x5a   :  { %2174 = vmatpush1.bf16.msra.mxu1 %v2600_v43  ;;  %2053 = vmatmul.mubr.f32.vlgmr.msra.gmra.mrb[4].mxu0 %v2555_v48 }
  0x5b   :  { %993 = vmatprep.mubr.f32.mxu1 %v2441_v0  ;;  %2214 = vmatpush3.bf16.msra.mxu0 %v2211_v29 }
  0x5c   :  { %2176 = vmatprep.subr.bf16.mxu1 %v2622_v16  ;;  %2216 = vmatprep.subr.bf16.mxu0 %v2215_v31 }
  0x5d   :  { %996 = vmatmul.mubr.f32.gmra.mrb[6].mxu1 %v2562_v54  ;;  %2063 = vmatprep.mubr.f32.mxu0 %v2540_v41  ;;  %v2183_v41 = vpack.c.bf16 %v824_v60, %v812_v56 }
  0x5e   :  { %2178 = vmatpush1.bf16.msra.mxu1 %v2631_v28  ;;  %1074 = vmatprep.mubr.f32.mxu1 %v2441_v0 }
  0x5f   :  { %2218 = vmatpush3.bf16.msra.mxu0 %v2215_v31  ;;  %2180 = vmatprep.subr.bf16.mxu1 %v2179_v38 }
  0x60   :  { %2220 = vmatprep.subr.bf16.mxu0 %v2195_v47 }
  0x61   :  { %1078 = vmatmul.mubr.f32.vlgmr.msra.gmra.mrb[4].mxu1 %v2558_v49 }
  0x62   :  { %2182 = vmatpush1.bf16.msra.mxu1 %v2181_v24  ;;  %2064 = vmatmul.mubr.f32.vlgmr.msra.gmra.mrb[4].mxu0 %v2562_v54  ;;  %v2231_v54 = vpack.c.bf16 %v1396_v5, %v1389_v59 }
  0x63   :  { %1083 = vmatprep.mubr.f32.mxu1 %v2441_v0  ;;  %2222 = vmatpush3.bf16.msra.mxu0 %v2195_v47 }
  0x64   :  { %2184 = vmatprep.subr.bf16.mxu1 %v2183_v41  ;;  %2224 = vmatprep.subr.bf16.mxu0 %v2199_v34 }
  0x65   :  { %1087 = vmatmul.mubr.f32.gmra.mrb[6].mxu1 %v2574_v1  ;;  %2074 = vmatprep.mubr.f32.mxu0 %v2558_v49  ;;  %v67_v49 = vlaneseq }
  0x66   :  { %2186 = vmatpush1.bf16.msra.mxu1 %v2185_v44  ;;  %1181 = vmatprep.mubr.f32.mxu1 %v2441_v0 }
  0x67   :  { %2226 = vmatpush3.bf16.msra.mxu0 %v2199_v34  ;;  %2188 = vmatprep.subr.bf16.mxu1 %v2594_v32 }
  0x68   :  { %2228 = vmatprep.subr.bf16.mxu0 %v2227_v46 }
  0x69   :  { %1183 = vmatmul.mubr.f32.vlgmr.msra.gmra.mrb[4].mxu1 %v2528_v35 }
  0x6a   :  { %2190 = vmatpush1.bf16.msra.mxu1 %v2600_v43  ;;  %2075 = vmatmul.mubr.f32.vlgmr.msra.gmra.mrb[4].mxu0 %v2574_v1  ;;  %v68_v43 = vshrl.u32 %v67_v49, 7 }
  0x6b   :  { %1188 = vmatprep.mubr.f32.mxu1 %v2441_v0  ;;  %2230 = vmatpush3.bf16.msra.mxu0 %v2227_v46 }
  0x6c   :  { %2192 = vmatprep.subr.bf16.mxu1 %v2622_v16  ;;  %2232 = vmatprep.subr.bf16.mxu0 %v2231_v54  ;;  %v69_v16 = vsub.s32 0, %v68_v43  ;;  %v77_v45 = vsub.s32 2, %v68_v43  ;;  %v81_v50 = vsub.s32 3, %v68_v43  ;;  %v85_v21 = vsub.s32 4, %v68_v43 }
  0x6d   :  { %1190 = vmatmul.mubr.f32.gmra.mrb[6].mxu1 %v2555_v48  ;;  %2085 = vmatprep.mubr.f32.mxu0 %v2528_v35 }
  0x6e   :  { %2194 = vmatpush1.bf16.msra.mxu1 %v2631_v28  ;;  %1268 = vmatprep.mubr.f32.mxu1 %v2441_v0  ;;  %v70_v25 = vrot.slane %v65_v17, %v69_v16  ;;  %v78_v51 = vrot.slane %v65_v17, %v77_v45  ;;  %v82_v57 = vrot.slane %v65_v17, %v81_v50 }
  0x6f   :  { %2234 = vmatpush3.bf16.msra.mxu0 %v2231_v54  ;;  %2196 = vmatprep.subr.bf16.mxu1 %v2195_v47  ;;  %v86_v4 = vrot.slane %v65_v17, %v85_v21 }
  0x70   :  { %2236 = vmatprep.subr.bf16.mxu0 %v2195_v47 }
  0x71   :  { %1270 = vmatmul.mubr.f32.vlgmr.msra.gmra.mrb[4].mxu1 %v2528_v35 }
  0x72   :  { %2198 = vmatpush3.bf16.msra.mxu1 %v2195_v47  ;;  %2086 = vmatmul.mubr.f32.vlgmr.msra.gmra.mrb[4].mxu0 %v2555_v48 }
  0x73   :  { %1275 = vmatprep.mubr.f32.mxu1 %v2441_v0  ;;  %2238 = vmatpush3.bf16.msra.mxu0 %v2195_v47 }
  0x74   :  { %2200 = vmatprep.subr.bf16.mxu1 %v2199_v34  ;;  %2240 = vmatprep.subr.bf16.mxu0 %v2199_v34 }
  0x75   :  { %1277 = vmatmul.mubr.f32.gmra.mrb[6].mxu1 %v2555_v48  ;;  %2096 = vmatprep.mubr.f32.mxu0 %v2528_v35  ;;  %v73_v35 = vsub.s32 1, %v68_v43 }
  0x76   :  { %2202 = vmatpush3.bf16.msra.mxu1 %v2199_v34  ;;  %2041 = vmatprep.mubr.f32.mxu1 %v2580_v6  ;;  %v2827_v6 = vand.u32 127, %v67_v49 }
  0x77   :  { %2242 = vmatpush3.bf16.msra.mxu0 %v2199_v34  ;;  %v74_v28 = vrot.slane %v65_v17, %v73_v35 }
  0x78   :  { %vm1836_vm1 = vcmp.lt.s32.totalorder %v2827_v6, 32  ;;  %vm1813_vm2 = vcmp.lt.s32.totalorder %v2827_v6, 4 }
  0x79   :  { %2042 = vmatmul.mubr.f32.vlgmr.msra.gmra.mrb[8].mxu1 %v2592_v30 }
  0x7a   :  { %2097 = vmatmul.mubr.f32.vlgmr.msra.gmra.mrb[4].mxu0 %v2555_v48 }
 0x114   :  { %v301_v1 = vpop.f32.mrb[0].mxu1 }
 0x115   :  { %v303_v32 = vpop.f32.mrb[1].mxu1  ;;  %v2243_v23 = vadd.f32 %v301_v1, %v70_v25 }
 0x116   :  { %v2245_v30 = vadd.f32 %v303_v32, %v74_v28 }
 0x118   :  { %v308_v0 = vpop.f32.mrb[2].mxu1 }
 0x119   :  { %v310_v53 = vpop.f32.mrb[3].mxu1  ;;  %v2247_v55 = vadd.f32 %v308_v0, %v70_v25 }
 0x11a   :  { %v2249_v60 = vadd.f32 %v310_v53, %v74_v28 }
 0x123   :  { %v679_v36 = vpop.f32.mrb[0].mxu0 }
 0x124   :  { %v2244_v48 = vadd.f32 %v2243_v23, %v679_v36  ;;  %v681_v39 = vpop.f32.mrb[1].mxu0 }
 0x125   :  { %v2246_v52 = vadd.f32 %v2245_v30, %v681_v39 }
 0x126   :  { %v1837_v56 = vmax.f32 %v2244_v48, 0.0 }
 0x127   :  { %v686_v61 = vpop.f32.mrb[2].mxu0  ;;  %v1875_v62 = vmax.f32 %v2246_v52, 0.0 }
 0x128   :  { %v2248_v10 = vadd.f32 %v2247_v55, %v686_v61  ;;  %v688_v11 = vpop.f32.mrb[3].mxu0  ;;  %v1841_v19 = vsel %vm1836_vm1, %v1837_v56, -inf }
 0x129   :  { %v2250_v40 = vadd.f32 %v2249_v60, %v688_v11  ;;  %1843 = vmax.xlane.f32.xlu1 %v1841_v19  ;;  %v2834_v42 = vsel %vm1836_vm1, %v1875_v62, -inf }
 0x12a   :  { %v1838_v27 = vmax.f32 %v2248_v10, 0.0 }
 0x12b   :  { %v1876_v31 = vmax.f32 %v2250_v40, 0.0 }
 0x12c   :  { %v1842_v47 = vsel %vm1836_vm1, %v1838_v27, -inf }
 0x12d   :  { %1879 = vmax.xlane.f32.xlu1 %v2834_v42  ;;  %v1878_v41 = vsel %vm1836_vm1, %v1876_v31, -inf }
 0x144   :  { %v1271_v14 = vpop.f32.mrb[4].mxu1 }
 0x145   :  { %v2251_v58 = vadd.f32 %v1271_v14, %v78_v51  ;;  %v1273_v15 = vpop.f32.mrb[5].mxu1 }
 0x146   :  { %v2252_v33 = vadd.f32 %v1273_v15, %v82_v57 }
 0x147   :  { %v1909_v20 = vmax.f32 %v2251_v58, 0.0 }
 0x148   :  { %v1278_v59 = vpop.f32.mrb[6].mxu1  ;;  %v1943_v63 = vmax.f32 %v2252_v33, 0.0 }
 0x149   :  { %v1280_v2 = vpop.f32.mrb[7].mxu1  ;;  %v1911_v3 = vsel %vm1836_vm1, %v1909_v20, -inf  ;;  %v2253_v38 = vadd.f32 %v1278_v59, %v78_v51 }
 0x14a   :  { %1913 = vmax.xlane.f32.xlu1 %v1911_v3  ;;  %v2841_v9 = vsel %vm1836_vm1, %v1943_v63, -inf  ;;  %v2254_v34 = vadd.f32 %v1280_v2, %v82_v57  ;;  %v2442_v2 = vmov 1  }
 0x14b   :  { %v1910_v24 = vmax.f32 %v2253_v38, 0.0  ;;  %2316 = vset.pattern.permute.xlu0 %v2442_v2 }
 0x14c   :  { %v2043_v5 = vpop.f32.mrb[8].mxu1  ;;  %v1944_v44 = vmax.f32 %v2254_v34, 0.0 }
 0x14d   :  { %v1369_v22 = vadd.f32 %v2043_v5, %v86_v4  ;;  %v1358_v7 = vpop.f32.mrb[9].mxu1  ;;  %v2098_v8 = vpop.f32.mrb[4].mxu0  ;;  %v1912_v46 = vsel %vm1836_vm1, %v1910_v24, -inf }
 0x14e   :  { %v1359_v37 = vadd.f32 %v1358_v7, %v86_v4  ;;  %1947 = vmax.xlane.f32.xlu1 %v2841_v9  ;;  %v1801_v12 = vpop.f32.mrb[5].mxu0  ;;  %v1946_v54 = vsel %vm1836_vm1, %v1944_v44, -inf }
 0x14f   :  { %v2256_v13 = vadd.f32 %v2098_v8, %v1369_v22 }
 0x150   :  { %v2258_v18 = vadd.f32 %v1801_v12, %v1359_v37  ;;  %v2444_v37 = vmov 2   ;;  %v2445_v12 = vmov 3  }
 0x151   :  { %v1817_v29 = vsel %vm1813_vm2, %v2256_v13, -inf }
 0x152   :  { %v1816_v26 = vsel %vm1813_vm2, %v2258_v18, -inf }
 0x153   :  { %1818 = vmax.xlane.f32.xlu0 %v1816_v26 }
 0x157   :  { %1820 = vmax.xlane.f32.xlu0 %v1817_v29 }
 0x15b   :  { %1845 = vmax.xlane.f32.xlu0 %v1842_v47 }
 0x15f   :  { %1881 = vmax.xlane.f32.xlu0 %v1878_v41 }
 0x163   :  { %1915 = vmax.xlane.f32.xlu0 %v1912_v46 }
 0x167   :  { %1949 = vmax.xlane.f32.xlu0 %v1946_v54 }
 0x1b6   :  { %v1844_v49 = vpop.xlane.xlu1 %1843 }
 0x1b7   :  { %v1847_v1 = vsub.f32 %v1841_v19, %v1844_v49 }
 0x1b9   :  { %v1849_v32 = vmul.f32 1.442695, %v1847_v1 }
 0x1ba   :  { %v1880_v17 = vpop.xlane.xlu1 %1879 }
 0x1bb   :  { %2323 = vpow2.f32 %v1849_v32  ;;  %v1883_v6 = vsub.f32 %v2834_v42, %v1880_v17 }
 0x1bd   :  { %v1885_v39 = vmul.f32 1.442695, %v1883_v6 }
 0x1c5   :  { %v2853_v43 = vpop.eup %2323 }
 0x1c6   :  { %1853 = vadd.xlane.f32.xlu0 %v2853_v43 }
 0x1d7   :  { %v1914_v23 = vpop.xlane.xlu1 %1913 }
 0x1d8   :  { %v1917_v52 = vsub.f32 %v1911_v3, %v1914_v23  ;;  %v2443_v3 = vmov 0  }
 0x1d9   :  { %2315 = vset.pattern.permute.xlu1 %v2443_v3 }
 0x1da   :  { %v1919_v10 = vmul.f32 1.442695, %v1917_v52 }
 0x1db   :  { %v1948_v60 = vpop.xlane.xlu1 %1947 }
 0x1dc   :  { %v1951_v19 = vsub.f32 %v2841_v9, %v1948_v60 }
 0x1de   :  { %v1953_v51 = vmul.f32 1.442695, %v1951_v19 }
 0x1e0   :  { %v1819_v0 = vpop.xlane.xlu0 %1818 }
 0x1e1   :  { %v1822_v53 = vsub.f32 %v1816_v26, %v1819_v0 }
 0x1e3   :  { %v1824_v16 = vmul.f32 1.442695, %v1822_v53 }
 0x1e4   :  { %v1821_v35 = vpop.xlane.xlu0 %1820 }
 0x1e5   :  { %2325 = vpow2.f32 %v1824_v16  ;;  %v1823_v25 = vsub.f32 %v1817_v29, %v1821_v35 }
 0x1e7   :  { %v1826_v28 = vmul.f32 1.442695, %v1823_v25 }
 0x1e8   :  { %v1846_v30 = vpop.xlane.xlu0 %1845 }
 0x1e9   :  { %2327 = vpow2.f32 %v1826_v28  ;;  %v1848_v36 = vsub.f32 %v1842_v47, %v1846_v30 }
 0x1eb   :  { %v1851_v48 = vmul.f32 1.442695, %v1848_v36 }
 0x1ec   :  { %v1882_v55 = vpop.xlane.xlu0 %1881 }
 0x1ed   :  { %2329 = vpow2.f32 %v1851_v48  ;;  %v1884_v56 = vsub.f32 %v1878_v41, %v1882_v55 }
 0x1ee   :  { %2331 = vpow2.f32 %v1885_v39 }
 0x1ef   :  { %v2326_v61 = vpop.eup %2325  ;;  %v1887_v62 = vmul.f32 1.442695, %v1884_v56 }
 0x1f0   :  { %1828 = vadd.xlane.f32.xlu1 %v2326_v61  ;;  %v1916_v11 = vpop.xlane.xlu0 %1915 }
 0x1f1   :  { %2333 = vpow2.f32 %v1887_v62  ;;  %v1918_v40 = vsub.f32 %v1912_v46, %v1916_v11 }
 0x1f2   :  { %2335 = vpow2.f32 %v1919_v10 }
 0x1f3   :  { %v2328_v42 = vpop.eup %2327  ;;  %v1921_v45 = vmul.f32 1.442695, %v1918_v40 }
 0x1f4   :  { %1830 = vadd.xlane.f32.xlu1 %v2328_v42  ;;  %v1950_v50 = vpop.xlane.xlu0 %1949 }
 0x1f5   :  { %2337 = vpow2.f32 %v1921_v45  ;;  %v1952_v57 = vsub.f32 %v1946_v54, %v1950_v50 }
 0x1f6   :  { %2339 = vpow2.f32 %v1953_v51 }
 0x1f7   :  { %v2858_v14 = vpop.eup %2329  ;;  %v1955_v58 = vmul.f32 1.442695, %v1952_v57 }
 0x1f8   :  { %1855 = vadd.xlane.f32.xlu1 %v2858_v14  ;;  %v2861_v15 = vpop.eup %2331 }
 0x1f9   :  { %2341 = vpow2.f32 %v1955_v58 }
 0x1fb   :  { %v2334_v21 = vpop.eup %2333 }
 0x1fc   :  { %1889 = vadd.xlane.f32.xlu1 %v2861_v15  ;;  %1891 = vadd.xlane.f32.xlu0 %v2334_v21  ;;  %v2864_v33 = vpop.eup %2335 }
 0x1ff   :  { %v2338_v20 = vpop.eup %2337 }
 0x200   :  { %1923 = vadd.xlane.f32.xlu1 %v2864_v33  ;;  %1925 = vadd.xlane.f32.xlu0 %v2338_v20  ;;  %v2867_v59 = vpop.eup %2339 }
 0x203   :  { %v2342_v63 = vpop.eup %2341 }
 0x204   :  { %1957 = vadd.xlane.f32.xlu0 %v2867_v59 }
 0x208   :  { %1959 = vadd.xlane.f32.xlu0 %v2342_v63 }
 0x253   :  { %v1854_v13 = vpop.xlane.xlu0 %1853 }
 0x27d   :  { %v1829_v4 = vpop.xlane.xlu1 %1828 }
 0x281   :  { %v1831_v5 = vpop.xlane.xlu1 %1830 }
 0x282   :  { %2343 = vrcp.f32 %v1831_v5 }
 0x283   :  { %2345 = vrcp.f32 %v1829_v4 }
 0x285   :  { %v1856_v27 = vpop.xlane.xlu1 %1855 }
 0x286   :  { %2347 = vrcp.f32 %v1856_v27 }
 0x289   :  { %v1892_v18 = vpop.xlane.xlu0 %1891  ;;  %v1890_v31 = vpop.xlane.xlu1 %1889 }
 0x28a   :  { %2349 = vrcp.f32 %v1892_v18 }
 0x28c   :  { %v2344_v22 = vpop.eup %2343 }
 0x28d   :  { %v1835_v7 = vmul.f32 %v2344_v22, %v2328_v42  ;;  %v2346_v8 = vpop.eup %2345  ;;  %v1926_v26 = vpop.xlane.xlu0 %1925 }
 0x28e   :  { %v1833_v9 = vmul.f32 %v2346_v8, %v2326_v61  ;;  %2351 = vrcp.f32 %v1926_v26  ;;  %v1924_v47 = vpop.xlane.xlu1 %1923 }
 0x28f   :  { %1868 = vperm.xlu1 %2315, %v1835_v7   ;;  %1902 = vperm.xlu0 %2316, %v1835_v7  }
 0x290   :  { %v2348_v24 = vpop.eup %2347 }
 0x291   :  { %v1958_v29 = vpop.xlane.xlu0 %1957  ;;  %v1860_v54 = vmul.f32 %v2348_v24, %v2858_v14 }
 0x293   :  { %2317 = vset.pattern.permute.xlu1 %v2444_v37  ;;  %2318 = vset.pattern.permute.xlu0 %v2443_v3 }
 0x294   :  { %1936 = vperm.xlu1 %2317, %v1835_v7   ;;  %1863 = vperm.xlu0 %2318, %v1833_v9   ;;  %v2350_v34 = vpop.eup %2349 }
 0x295   :  { %v1960_v38 = vpop.xlane.xlu0 %1959  ;;  %v1896_v49 = vmul.f32 %v2350_v34, %v2334_v21 }
 0x296   :  { %2353 = vrcp.f32 %v1960_v38 }
 0x297   :  { %2355 = vrcp.f32 %v1890_v31 }
 0x298   :  { %2319 = vset.pattern.permute.xlu1 %v2442_v2  ;;  %2322 = vset.pattern.permute.xlu0 %v2445_v12  ;;  %2357 = vrcp.f32 %v1854_v13  ;;  %v2352_v46 = vpop.eup %2351 }
 0x299   :  { %1898 = vperm.xlu1 %2319, %v1833_v9   ;;  %1970 = vperm.xlu0 %2322, %v1835_v7   ;;  %2359 = vrcp.f32 %v1924_v47  ;;  %v1930_v53 = vmul.f32 %v2352_v46, %v2338_v20 }
 0x29a   :  { %2361 = vrcp.f32 %v1958_v29 }
 0x29d   :  { %2320 = vset.pattern.permute.xlu1 %v2444_v37 }
 0x29e   :  { %1932 = vperm.xlu1 %2320, %v1833_v9  }
 0x2a0   :  { %v2354_v17 = vpop.eup %2353 }
 0x2a1   :  { %v1964_v28 = vmul.f32 %v2354_v17, %v2342_v63  ;;  %v2356_v6 = vpop.eup %2355 }
 0x2a2   :  { %2321 = vset.pattern.permute.xlu1 %v2445_v12  ;;  %v2358_v36 = vpop.eup %2357  ;;  %v1894_v55 = vmul.f32 %v2356_v6, %v2861_v15 }
 0x2a3   :  { %1966 = vperm.xlu1 %2321, %v1833_v9   ;;  %v2360_v52 = vpop.eup %2359  ;;  %v1858_v60 = vmul.f32 %v2358_v36, %v2853_v43 }
 0x2a4   :  { %v1928_v62 = vmul.f32 %v2360_v52, %v2864_v33  ;;  %v2362_v11 = vpop.eup %2361 }
 0x2a5   :  { %v1962_v45 = vmul.f32 %v2362_v11, %v2867_v59 }
 0x30e   :  { %v1869_v41 = vpop.permute.xlu1 %1868  ;;  %v1903_v44 = vpop.permute.xlu0 %1902 }
 0x30f   :  { %v1872_v1 = vmul.f32 %v1869_v41, %v1860_v54  ;;  %v1906_v32 = vmul.f32 %v1903_v44, %v1896_v49 }
 0x311   :  { %v1908_v25 = vadd.f32 %v1906_v32, %v1872_v1 }
 0x313   :  { %v1937_v0 = vpop.permute.xlu1 %1936  ;;  %v1864_v16 = vpop.permute.xlu0 %1863 }
 0x314   :  { %v1940_v35 = vmul.f32 %v1937_v0, %v1930_v53  ;;  %v1871_v19 = vmul.f32 %v1864_v16, %v1858_v60 }
 0x316   :  { %v1942_v48 = vadd.f32 %v1940_v35, %v1908_v25 }
 0x318   :  { %v1899_v23 = vpop.permute.xlu1 %1898  ;;  %v1971_v30 = vpop.permute.xlu0 %1970 }
 0x319   :  { %v1974_v39 = vmul.f32 %v1971_v30, %v1964_v28  ;;  %v1905_v61 = vmul.f32 %v1899_v23, %v1894_v55 }
 0x31b   :  { %v1976_v56 = vadd.f32 %v1974_v39, %v1942_v48  ;;  %v1907_v42 = vadd.f32 %v1905_v61, %v1871_v19 }
 0x31d   :  { %1978 = vst [vmem:[#allocation7 + $0x8] sm:$0xff] %v1976_v56  ;;  %v1933_v10 = vpop.permute.xlu1 %1932 }
 0x31e   :  { %v1939_v40 = vmul.f32 %v1933_v10, %v1928_v62 }
 0x320   :  { %v1941_v51 = vadd.f32 %v1939_v40, %v1907_v42 }
 0x322   :  { %v1967_v50 = vpop.permute.xlu1 %1966 }
 0x323   :  { %v1973_v57 = vmul.f32 %v1967_v50, %v1962_v45 }
 0x325   :  { %v1975_v14 = vadd.f32 %v1973_v57, %v1941_v51 }
 0x327   :  { %1977 = vst [vmem:[#allocation7] sm:$0xff] %v1975_v14 }
 0x328   :  { %2418 = shalt.err (!%p2415_p6)
}
 0x329   :  { %s2419_s17 = scalar_lea.hbm %s2893_s3, 256 }
 0x32a   :  { %p2420_p7 = scmp.ne.s32.totalorder %s2893_s3, %s2419_s17  ;;  %p2423_p8 = scmp.lt.u32.totalorder %s2419_s17, %s2893_s3 }
 0x32c   :  { %p2425_p9 = pnand %p2423_p8, %p2420_p7 }
 0x32e   :  { %2428 = shalt.err (!%p2425_p9)
}
 0x32f   :  { %1990 = dma.vmem_to_hbm [thread:$0]  %s1985_s13, 256, %s2893_s3, [#allocation4], %s2436_s22, %s2436_s22, %s2437_s23  }
 0x330   :  { %2433 = dma.done.wait [#allocation4], 256  }
 0x331   :  { %2434 = vsyncadd [#allocation4], 4294967040 }
 0x332   :  { %1994 = vsyncpa [#allocation3], 1 }
 0x333   :  { %1995 = vsyncpa [#allocation6], 1 }
 0x334   :  { %1996 = vsyncpa [#allocation4], 1 }

</bundles_post_ra>
